<compile_context>
chip_gen: v6e
topology: v6e:2x2x1
jax: 0.10.0
libtpu: 0.0.40
codegen_flags: <defaults>
</compile_context>

<pallas_src>
import functools

import jax
import jax.numpy as jnp
from jax.experimental import pallas as pl
from jax.experimental.pallas import tpu as pltpu


def _round_up(x, m):
    return (x + m - 1) // m * m


def _pad_axis(a, axis, new_size):
    if a.shape[axis] == new_size:
        return a
    widths = [(0, 0)] * a.ndim
    widths[axis] = (0, new_size - a.shape[axis])
    return jnp.pad(a, widths)


def _critic_kernel(num_hidden, dot_dtype, state_ref, action_ref, *refs):
    # refs = [w1_s, w1_a, b1,  w2, b2, ..., wL, bL,  wr_row, br,  out_ref]
    out_ref = refs[-1]
    p = refs[:-1]

    # Layer 1: split-weight matmuls replace concat([state, action]) @ W1.
    # Weights are already in dot_dtype (cast once in the wrapper); only the
    # per-tile activations are cast here.  Accumulation / bias / ReLU in f32.
    x = (
        jnp.dot(state_ref[...].astype(dot_dtype), p[0][...],
                preferred_element_type=jnp.float32)
        + jnp.dot(action_ref[...].astype(dot_dtype), p[1][...],
                  preferred_element_type=jnp.float32)
        + p[2][...]
    )
    x = jnp.maximum(x, 0.0)

    # Remaining hidden layers.
    idx = 3
    for _ in range(num_hidden - 1):
        w_ref, b_ref = p[idx], p[idx + 1]
        idx += 2
        x = jnp.dot(x.astype(dot_dtype), w_ref[...],
                    preferred_element_type=jnp.float32) + b_ref[...]
        x = jnp.maximum(x, 0.0)

    # f2r head, f32: (1, H) @ (H, tile_b) -> (1, tile_b) lane-dense Q row.
    # Batch lives on the lane axis, so the store is lane-dense and the output
    # HBM array carries exactly 4 bytes per batch row (no broadcast slab).
    wr_row = p[idx][...]      # (1, H_last), f32
    br = p[idx + 1][...]      # (1, 1), f32
    q_row = jnp.dot(wr_row, x.T, preferred_element_type=jnp.float32) + br
    out_ref[...] = q_row.astype(out_ref.dtype)   # out_ref: (1, tile_b)


def critic_forward(state, action, params, *, tile_b=512,
                   dot_dtype=jnp.bfloat16, core_parallel=False):
    """Q(s, a) via the Pallas kernel.

    params: [(W1, b1), ..., (WL, bL), (Wr, br)] with W as (in, out), b as (1, out).
    dot_dtype: MXU operand dtype (bfloat16 recommended on v6e/v7x; float32 for
      full precision).  Accumulation, bias, ReLU and the head stay float32.
    core_parallel: on v7x, shard the batch grid axis across the two TensorCores.
    """
    batch, state_dim = state.shape
    _, action_dim = action.shape
    num_hidden = len(params) - 1

    # Batch tile: multiple of 128 (packed output), never bigger than the
    # 128-rounded batch (don't over-pad small batches).
    tile_b = _round_up(max(tile_b, 128), 128)
    tile_b = min(tile_b, _round_up(batch, 128))
    padded_batch = _round_up(batch, tile_b)
    if padded_batch != batch:
        pad = padded_batch - batch
        state = jnp.pad(state, ((0, pad), (0, 0)))
        action = jnp.pad(action, ((0, pad), (0, 0)))

    # Zero-pad hidden widths up to multiples of 128 (lane-dense intermediates;
    # exact because zero weights/bias propagate through ReLU and the head).
    h_sizes = [w.shape[1] for w, _ in params[:-1]]
    h_pad = [_round_up(h, 128) for h in h_sizes]

    # Flatten params: split W1, pad hidden dims, pre-cast matmul weights to
    # dot_dtype once (biases and the f2r head stay f32).
    w1, b1 = params[0]
    flat = [
        _pad_axis(w1[:state_dim], 1, h_pad[0]).astype(dot_dtype),
        _pad_axis(w1[state_dim:], 1, h_pad[0]).astype(dot_dtype),
        _pad_axis(b1, 1, h_pad[0]),
    ]
    for li, (w, b) in enumerate(params[1:-1], start=1):
        w = _pad_axis(_pad_axis(w, 0, h_pad[li - 1]), 1, h_pad[li])
        flat += [w.astype(dot_dtype), _pad_axis(b, 1, h_pad[li])]
    wr, br = params[-1]                                   # (h_last, 1), (1, 1)
    flat += [_pad_axis(wr.reshape(1, -1), 1, h_pad[-1]), br]   # f32 head row

    grid = (padded_batch // tile_b,)
    batch_map = lambda i: (i, 0)
    const_map = lambda i: (0, 0)        # params stay VMEM-resident (no re-DMA)

    in_specs = [
        pl.BlockSpec((tile_b, state_dim), batch_map),
        pl.BlockSpec((tile_b, action_dim), batch_map),
    ] + [pl.BlockSpec(p.shape, const_map) for p in flat]

    # Packed, lane-dense Q output: one (1, tile_b) row per grid step.
    out_specs = pl.BlockSpec((None, 1, tile_b), lambda i: (i, 0, 0))
    out_shape = jax.ShapeDtypeStruct((padded_batch // tile_b, 1, tile_b),
                                     jnp.float32)

    # Advisory cost estimate so XLA can schedule around this small kernel.
    flops = 0
    prev = state_dim + action_dim
    for hp in h_pad:
        flops += 2 * padded_batch * prev * hp
        prev = hp
    flops += 2 * padded_batch * prev                      # f2r head
    bytes_accessed = int(
        state.size * state.dtype.itemsize
        + action.size * action.dtype.itemsize
        + sum(int(p.size) * p.dtype.itemsize for p in flat)
        + padded_batch * 4)

    dims = (pltpu.CORE_PARALLEL,) if core_parallel else ("parallel",)

    kernel = functools.partial(_critic_kernel, num_hidden, dot_dtype)

    out_packed = pl.pallas_call(
        kernel,
        grid=grid,
        in_specs=in_specs,
        out_specs=out_specs,
        out_shape=out_shape,
        compiler_params=pltpu.CompilerParams(dimension_semantics=dims),
        cost_estimate=pl.CostEstimate(flops=int(flops), transcendentals=0,
                                      bytes_accessed=bytes_accessed),
    )(state, action, *flat)

    # (num_tiles, 1, tile_b) -> (padded_batch, 1), row order preserved.
    return out_packed.reshape(padded_batch, 1)[:batch]


def init_linear_params(key, in_dim, out_dim):
    # Matches torch.nn.Linear default init: U(-1/sqrt(in_dim), 1/sqrt(in_dim))
    kw, kb = jax.random.split(key)
    bound = 1.0 / jnp.sqrt(jnp.float32(in_dim))
    w = jax.random.uniform(kw, (in_dim, out_dim), jnp.float32, -bound, bound)
    b = jax.random.uniform(kb, (1, out_dim), jnp.float32, -bound, bound)
    return w, b


def make_critic_params(key, state_dim, action_dim, arch="32-32"):
    in_dim = state_dim + action_dim
    params = []
    for h in (int(h) for h in arch.split("-")):
        key, sub = jax.random.split(key)
        params.append(init_linear_params(sub, in_dim, h))
        in_dim = h
    key, sub = jax.random.split(key)
    params.append(init_linear_params(sub, in_dim, 1))    # f2r: Linear(in_dim, 1)
    return params


if __name__ == "__main__":
    key = jax.random.PRNGKey(0)

    state_dim, action_dim = 12, 4
    arch = "32-32"   # small analogue of the default "256-256"

    k_state, k_action, k_params, k_state2, k_action2 = jax.random.split(key, 5)
    params = make_critic_params(k_params, state_dim, action_dim, arch)

    def ref_forward(s, a, ps):
        x = jnp.concatenate([s, a], axis=1)
        for w, b in ps[:-1]:
            x = jnp.maximum(x @ w + b, 0.0)
        wr, br = ps[-1]
        return x @ wr + br

    # Case 1: small batch, single grid step, f32 MXU operands (tight check).
    batch = 20
    state = jax.random.normal(k_state, (batch, state_dim), jnp.float32)
    action = jax.random.normal(k_action, (batch, action_dim), jnp.float32)
    q_ref = ref_forward(state, action, params)
    q = critic_forward(state, action, params, dot_dtype=jnp.float32)
    jax.block_until_ready(q)
    assert q.shape == (batch, 1)
    assert jnp.allclose(q, q_ref, atol=1e-4, rtol=1e-4)

    # Case 2: multi-tile grid (batch 300 padded to 512, tile_b 256 -> 2 steps).
    batch2 = 300
    state2 = jax.random.normal(k_state2, (batch2, state_dim), jnp.float32)
    action2 = jax.random.normal(k_action2, (batch2, action_dim), jnp.float32)
    q2_ref = ref_forward(state2, action2, params)
    q2 = critic_forward(state2, action2, params, tile_b=256, dot_dtype=jnp.float32)
    jax.block_until_ready(q2)
    assert q2.shape == (batch2, 1)
    assert jnp.allclose(q2, q2_ref, atol=1e-4, rtol=1e-4)

    # Case 3: default bf16 MXU-operand path (recommended on v6e/v7x); loose
    # tolerance vs the f32 reference since operands round to bf16
    # (accumulation, bias, ReLU and the head stay f32).
    q_bf16 = critic_forward(state, action, params)
    jax.block_until_ready(q_bf16)
    assert q_bf16.shape == (batch, 1)
    assert jnp.allclose(q_bf16, q_ref, atol=1e-1, rtol=1e-1)

    print("KERNEL_OK")
</pallas_src>

<mosaic_0001>
module attributes {stable_mosaic.version = 11 : i64} {
  func.func @_critic_kernel(%arg0: i32, %arg1: memref<128x12xf32, #tpu.memory_space<vmem>>, %arg2: memref<128x4xf32, #tpu.memory_space<vmem>>, %arg3: memref<12x128xf32, #tpu.memory_space<vmem>>, %arg4: memref<4x128xf32, #tpu.memory_space<vmem>>, %arg5: memref<1x128xf32, #tpu.memory_space<vmem>>, %arg6: memref<128x128xf32, #tpu.memory_space<vmem>>, %arg7: memref<1x128xf32, #tpu.memory_space<vmem>>, %arg8: memref<1x128xf32, #tpu.memory_space<vmem>>, %arg9: memref<1x1xf32, #tpu.memory_space<vmem>>, %arg10: memref<1x1x128xf32, #tpu.memory_space<vmem>>) attributes {dimension_semantics = [#tpu.dimension_semantics<parallel>], iteration_bounds = array<i64: 1>, scalar_prefetch = 0 : i64, scratch_operands = 0 : i64, tpu.core_type = #tpu.core_type<tc>, window_params = [{transform_indices = @transform_0, window_bounds = array<i64: 128, 12>}, {transform_indices = @transform_1, window_bounds = array<i64: 128, 4>}, {pipeline_mode = #tpu.pipeline_mode<synchronous>, transform_indices = @transform_2, window_bounds = array<i64: 12, 128>}, {pipeline_mode = #tpu.pipeline_mode<synchronous>, transform_indices = @transform_3, window_bounds = array<i64: 4, 128>}, {pipeline_mode = #tpu.pipeline_mode<synchronous>, transform_indices = @transform_4, window_bounds = array<i64: 1, 128>}, {pipeline_mode = #tpu.pipeline_mode<synchronous>, transform_indices = @transform_5, window_bounds = array<i64: 128, 128>}, {pipeline_mode = #tpu.pipeline_mode<synchronous>, transform_indices = @transform_6, window_bounds = array<i64: 1, 128>}, {pipeline_mode = #tpu.pipeline_mode<synchronous>, transform_indices = @transform_7, window_bounds = array<i64: 1, 128>}, {pipeline_mode = #tpu.pipeline_mode<synchronous>, transform_indices = @transform_8, window_bounds = array<i64: 1, 1>}, {transform_indices = @transform_9, window_bounds = array<i64: 1, 1, 128>}]} {
    %c0 = arith.constant 0 : index
    %c0_0 = arith.constant 0 : index
    %0 = vector.load %arg1[%c0, %c0_0] : memref<128x12xf32, #tpu.memory_space<vmem>>, vector<128x12xf32>
    %c0_1 = arith.constant 0 : index
    %c0_2 = arith.constant 0 : index
    %1 = vector.load %arg3[%c0_1, %c0_2] : memref<12x128xf32, #tpu.memory_space<vmem>>, vector<12x128xf32>
    %cst = arith.constant dense<0.000000e+00> : vector<128x128xf32>
    %2 = tpu.matmul %0, %1, %cst {dimension_numbers = #tpu.dot_dimension_numbers<[1], [0], [0], [1], [0, 0, 1, 1], [], []>} : vector<128x12xf32>, vector<12x128xf32>, vector<128x128xf32> -> vector<128x128xf32>
    %c0_3 = arith.constant 0 : index
    %c0_4 = arith.constant 0 : index
    %3 = vector.load %arg2[%c0_3, %c0_4] : memref<128x4xf32, #tpu.memory_space<vmem>>, vector<128x4xf32>
    %c0_5 = arith.constant 0 : index
    %c0_6 = arith.constant 0 : index
    %4 = vector.load %arg4[%c0_5, %c0_6] : memref<4x128xf32, #tpu.memory_space<vmem>>, vector<4x128xf32>
    %cst_7 = arith.constant dense<0.000000e+00> : vector<128x128xf32>
    %5 = tpu.matmul %3, %4, %cst_7 {dimension_numbers = #tpu.dot_dimension_numbers<[1], [0], [0], [1], [0, 0, 1, 1], [], []>} : vector<128x4xf32>, vector<4x128xf32>, vector<128x128xf32> -> vector<128x128xf32>
    %6 = arith.addf %2, %5 : vector<128x128xf32>
    %c0_8 = arith.constant 0 : index
    %c0_9 = arith.constant 0 : index
    %7 = vector.load %arg5[%c0_8, %c0_9] : memref<1x128xf32, #tpu.memory_space<vmem>>, vector<1x128xf32>
    %8 = vector.broadcast %7 : vector<1x128xf32> to vector<128x128xf32>
    %9 = arith.addf %6, %8 : vector<128x128xf32>
    %cst_10 = arith.constant 0.000000e+00 : f32
    %10 = vector.broadcast %cst_10 : f32 to vector<128x128xf32>
    %11 = arith.maximumf %9, %10 : vector<128x128xf32>
    %c0_11 = arith.constant 0 : index
    %c0_12 = arith.constant 0 : index
    %12 = vector.load %arg6[%c0_11, %c0_12] : memref<128x128xf32, #tpu.memory_space<vmem>>, vector<128x128xf32>
    %cst_13 = arith.constant dense<0.000000e+00> : vector<128x128xf32>
    %13 = tpu.matmul %11, %12, %cst_13 {dimension_numbers = #tpu.dot_dimension_numbers<[1], [0], [0], [1], [0, 0, 1, 1], [], []>} : vector<128x128xf32>, vector<128x128xf32>, vector<128x128xf32> -> vector<128x128xf32>
    %c0_14 = arith.constant 0 : index
    %c0_15 = arith.constant 0 : index
    %14 = vector.load %arg7[%c0_14, %c0_15] : memref<1x128xf32, #tpu.memory_space<vmem>>, vector<1x128xf32>
    %15 = vector.broadcast %14 : vector<1x128xf32> to vector<128x128xf32>
    %16 = arith.addf %13, %15 : vector<128x128xf32>
    %cst_16 = arith.constant 0.000000e+00 : f32
    %17 = vector.broadcast %cst_16 : f32 to vector<128x128xf32>
    %18 = arith.maximumf %16, %17 : vector<128x128xf32>
    %c0_17 = arith.constant 0 : index
    %c0_18 = arith.constant 0 : index
    %19 = vector.load %arg8[%c0_17, %c0_18] : memref<1x128xf32, #tpu.memory_space<vmem>>, vector<1x128xf32>
    %c0_19 = arith.constant 0 : index
    %c0_20 = arith.constant 0 : index
    %20 = vector.load %arg9[%c0_19, %c0_20] : memref<1x1xf32, #tpu.memory_space<vmem>>, vector<1x1xf32>
    %21 = tpu.transpose %18, [1, 0] : vector<128x128xf32> -> vector<128x128xf32>
    %cst_21 = arith.constant dense<0.000000e+00> : vector<1x128xf32>
    %22 = tpu.matmul %19, %21, %cst_21 {dimension_numbers = #tpu.dot_dimension_numbers<[1], [0], [0], [1], [0, 0, 1, 1], [], []>} : vector<1x128xf32>, vector<128x128xf32>, vector<1x128xf32> -> vector<1x128xf32>
    %23 = vector.broadcast %20 : vector<1x1xf32> to vector<1x128xf32>
    %24 = arith.addf %22, %23 : vector<1x128xf32>
    %c0_22 = arith.constant 0 : index
    %c0_23 = arith.constant 0 : index
    %c0_24 = arith.constant 0 : index
    %25 = vector.load %arg10[%c0_22, %c0_23, %c0_24] : memref<1x1x128xf32, #tpu.memory_space<vmem>>, vector<1x1x128xf32>
    %26 = vector.shape_cast %25 : vector<1x1x128xf32> to vector<1x128xf32>
    %27 = vector.shape_cast %24 : vector<1x128xf32> to vector<1x1x128xf32>
    tpu.vector_store %arg10[%c0_22, %c0_23, %c0_24], %27 {strides = array<i32>} : memref<1x1x128xf32, #tpu.memory_space<vmem>>, vector<1x1x128xf32>,
    return
  }
  func.func @transform_0(%arg0: i32) -> (i32, i32) {
    %c0_i32 = arith.constant 0 : i32
    %c0_i32_0 = arith.constant 0 : i32
    return %arg0, %c0_i32 : i32, i32
  }
  func.func @transform_1(%arg0: i32) -> (i32, i32) {
    %c0_i32 = arith.constant 0 : i32
    %c0_i32_0 = arith.constant 0 : i32
    return %arg0, %c0_i32 : i32, i32
  }
  func.func @transform_2(%arg0: i32) -> (i32, i32) {
    %c0_i32 = arith.constant 0 : i32
    %c0_i32_0 = arith.constant 0 : i32
    %c0_i32_1 = arith.constant 0 : i32
    return %c0_i32, %c0_i32_0 : i32, i32
  }
  func.func @transform_3(%arg0: i32) -> (i32, i32) {
    %c0_i32 = arith.constant 0 : i32
    %c0_i32_0 = arith.constant 0 : i32
    %c0_i32_1 = arith.constant 0 : i32
    return %c0_i32, %c0_i32_0 : i32, i32
  }
  func.func @transform_4(%arg0: i32) -> (i32, i32) {
    %c0_i32 = arith.constant 0 : i32
    %c0_i32_0 = arith.constant 0 : i32
    %c0_i32_1 = arith.constant 0 : i32
    return %c0_i32, %c0_i32_0 : i32, i32
  }
  func.func @transform_5(%arg0: i32) -> (i32, i32) {
    %c0_i32 = arith.constant 0 : i32
    %c0_i32_0 = arith.constant 0 : i32
    %c0_i32_1 = arith.constant 0 : i32
    return %c0_i32, %c0_i32_0 : i32, i32
  }
  func.func @transform_6(%arg0: i32) -> (i32, i32) {
    %c0_i32 = arith.constant 0 : i32
    %c0_i32_0 = arith.constant 0 : i32
    %c0_i32_1 = arith.constant 0 : i32
    return %c0_i32, %c0_i32_0 : i32, i32
  }
  func.func @transform_7(%arg0: i32) -> (i32, i32) {
    %c0_i32 = arith.constant 0 : i32
    %c0_i32_0 = arith.constant 0 : i32
    %c0_i32_1 = arith.constant 0 : i32
    return %c0_i32, %c0_i32_0 : i32, i32
  }
  func.func @transform_8(%arg0: i32) -> (i32, i32) {
    %c0_i32 = arith.constant 0 : i32
    %c0_i32_0 = arith.constant 0 : i32
    %c0_i32_1 = arith.constant 0 : i32
    return %c0_i32, %c0_i32_0 : i32, i32
  }
  func.func @transform_9(%arg0: i32) -> (i32, i32, i32) {
    %c0_i32 = arith.constant 0 : i32
    %c0_i32_0 = arith.constant 0 : i32
    %c0_i32_1 = arith.constant 0 : i32
    return %arg0, %c0_i32, %c0_i32_0 : i32, i32, i32
  }
}

</mosaic_0001>

<bundles_post_ra>
// kernel: tpu_custom_call.1
= control target key start
LH: loop header
LB: loop body
LE: loop exit
PB: predicated region body
PF: predicated region fallthrough
CT: control target
= control target key end

     0   :  { %s1374_s0 = inlined_call_operand.vmem [shape: f32[128,12], index: 0, kind: input, shape index: {}]   ;;  %s1375_s1 = inlined_call_operand.vmem [shape: f32[128,4], index: 1, kind: input, shape index: {}]   ;;  %s1376_s2 = inlined_call_operand.vmem [shape: f32[12,128], index: 2, kind: input, shape index: {}]   ;;  %s1377_s3 = inlined_call_operand.vmem [shape: f32[4,128], index: 3, kind: input, shape index: {}]   ;;  %s1378_s4 = inlined_call_operand.vmem [shape: f32[1,128], index: 4, kind: input, shape index: {}]   ;;  %s1379_s5 = inlined_call_operand.vmem [shape: f32[128,128], index: 5, kind: input, shape index: {}]   ;;  %s1380_s6 = inlined_call_operand.vmem [shape: f32[1,128], index: 6, kind: input, shape index: {}]   ;;  %s1381_s7 = inlined_call_operand.vmem [shape: f32[1,128], index: 7, kind: input, shape index: {}]   ;;  %s1382_s8 = inlined_call_operand.<no memory space> [shape: f32[1,1], index: 8, kind: input, shape index: {}]   ;;  %s1383_s9 = inlined_call_operand.hbm [shape: f32[1,1,128], index: 9, kind: output, shape index: {}]  }
   0x1   :  { %v14_v0 = vstv %s1382_s8 }
   0x2   :  { %15 = vst [vmem:[#allocation2] sm:$0x1] %v14_v0 }
   0x3   :  { %v69_v1 = vld [vmem:[%s1377_s3] sm:$0xf]  ;;  %vm119_vm0 = vcmask 1043456   ;;  %v52_v2 = vld [vmem:[%s1376_s2 + $0x8] sm:$0xf]  ;;  %vm70_vm1 = vcmask 31744  }
   0x4   :  { %v53_v3 = vld [vmem:[%s1375_s1] sm:$0xff]  ;;  %904 = vmatprep.subr.msk.mxu0 %vm119_vm0, %v69_v1  ;;  %930 = vmatprep.subr.msk.mxu1 %vm119_vm0, %v52_v2  ;;  %v54_v4 = vld [vmem:[%s1375_s1 + $0x8] sm:$0xff]  ;;  %vm268_vm2 = vcmask 97280   ;;  %v55_v7 = vld [vmem:[%s1375_s1 + $0x10] sm:$0xff] }
   0x5   :  { %v51_v5 = vld [vmem:[%s1376_s2] sm:$0xff]  ;;  %905 = vmatpush3.msk.msra.mxu0 %vm119_vm0, %v69_v1  ;;  %906 = vmatprep.mubr.msk.f32.mxu0 %vm70_vm1, %v53_v3  ;;  %v36_v8 = vld [vmem:[%s1374_s0 + $0x8] sm:$0xff]  ;;  %v56_v9 = vld [vmem:[%s1375_s1 + $0x18] sm:$0xff] }
   0x6   :  { %v35_v6 = vld [vmem:[%s1374_s0] sm:$0xff]  ;;  %931 = vmatpush3.msk.msra.mxu1 %vm119_vm0, %v52_v2  ;;  %907 = vmatmul.mubr.msk.f32.vlgmr.msra.gmra.mxu0 %vm70_vm1, %v54_v4  ;;  %v37_v10 = vld [vmem:[%s1374_s0 + $0x10] sm:$0xff]  ;;  %v38_v12 = vld [vmem:[%s1374_s0 + $0x18] sm:$0xff] }
   0x7   :  { %932 = vmatprep.subr.mxu1 %v51_v5  ;;  %934 = vmatprep.mubr.msk.f32.mxu1 %vm268_vm2, %v35_v6  ;;  %v57_v11 = vld [vmem:[%s1375_s1 + $0x20] sm:$0xff]  ;;  %v58_v13 = vld [vmem:[%s1375_s1 + $0x28] sm:$0xff]  ;;  %v59_v15 = vld [vmem:[%s1375_s1 + $0x30] sm:$0xff] }
   0x8   :  { %933 = vmatpush3.msra.mxu1 %v51_v5  ;;  %909 = vmatprep.mubr.msk.f32.mxu0 %vm70_vm1, %v55_v7  ;;  %v39_v14 = vld [vmem:[%s1374_s0 + $0x20] sm:$0xff]  ;;  %v40_v16 = vld [vmem:[%s1374_s0 + $0x28] sm:$0xff]  ;;  %v519_v17 = vld [vmem:[%s1379_s5 + $0x78] sm:$0xff] }
   0x9   :  { %935 = vmatmul.mubr.msk.f32.vlgmr.msra.gmra.mxu1 %vm268_vm2, %v36_v8  ;;  %v60_v18 = vld [vmem:[%s1375_s1 + $0x38] sm:$0xff]  ;;  %v41_v19 = vld [vmem:[%s1374_s0 + $0x30] sm:$0xff]  ;;  %958 = vmatprep.subr.mxu0 %v519_v17  ;;  %v61_v21 = vld [vmem:[%s1375_s1 + $0x40] sm:$0xff] }
   0xa   :  { %910 = vmatmul.mubr.msk.f32.gmra.mxu0 %vm70_vm1, %v56_v9  ;;  %937 = vmatprep.mubr.msk.f32.mxu1 %vm268_vm2, %v37_v10  ;;  %v518_v20 = vld [vmem:[%s1379_s5 + $0x70] sm:$0xff]  ;;  %v517_v22 = vld [vmem:[%s1379_s5 + $0x68] sm:$0xff]  ;;  %v42_v23 = vld [vmem:[%s1374_s0 + $0x38] sm:$0xff] }
   0xb   :  { %912 = vmatprep.mubr.msk.f32.mxu0 %vm70_vm1, %v57_v11  ;;  %959 = vmatpush3.msra.mxu0 %v519_v17 }
   0xc   :  { %960 = vmatprep.subr.mxu0 %v518_v20 }
   0xd   :  { %938 = vmatmul.mubr.msk.f32.gmra.mxu1 %vm268_vm2, %v38_v12 }
   0xe   :  { %913 = vmatmul.mubr.msk.f32.gmra.mxu0 %vm70_vm1, %v58_v13  ;;  %940 = vmatprep.mubr.msk.f32.mxu1 %vm268_vm2, %v39_v14 }
   0xf   :  { %915 = vmatprep.mubr.msk.f32.mxu0 %vm70_vm1, %v59_v15 }
  0x11   :  { %941 = vmatmul.mubr.msk.f32.gmra.mxu1 %vm268_vm2, %v40_v16 }
  0x12   :  { %916 = vmatmul.mubr.msk.f32.gmra.mxu0 %vm70_vm1, %v60_v18  ;;  %943 = vmatprep.mubr.msk.f32.mxu1 %vm268_vm2, %v41_v19 }
  0x13   :  { %16 = vsyncpa [#allocation4], 0  ;;  %918 = vmatprep.mubr.msk.f32.mxu0 %vm70_vm1, %v61_v21  ;;  %v62_v24 = vld [vmem:[%s1375_s1 + $0x48] sm:$0xff]  ;;  %v43_v25 = vld [vmem:[%s1374_s0 + $0x40] sm:$0xff]  ;;  %961 = vmatpush3.msra.mxu0 %v518_v20  ;;  %vm1077_vm3 = vmmov 0   ;;  %s1079_s18 = smov [#allocation3]  }
  0x14   :  { %v63_v26 = vld [vmem:[%s1375_s1 + $0x50] sm:$0xff]  ;;  %962 = vmatprep.subr.mxu0 %v517_v22  ;;  %v516_v27 = vld [vmem:[%s1379_s5 + $0x60] sm:$0xff]  ;;  %v44_v28 = vld [vmem:[%s1374_s0 + $0x48] sm:$0xff]  ;;  %s776_s8 = sshll.u32 %s1079_s18, 4  ;;  %s777_s8 = int_to_ptr.vmem [resolvable:$true] %s776_s8 }
  0x15   :  { %944 = vmatmul.mubr.msk.f32.gmra.mxu1 %vm268_vm2, %v42_v23  ;;  %963 = vmatpush3.msra.mxu0 %v517_v22  ;;  %v515_v29 = vld [vmem:[%s1379_s5 + $0x58] sm:$0xff]  ;;  %v45_v31 = vld [vmem:[%s1374_s0 + $0x50] sm:$0xff]  ;;  %v65_v32 = vld [vmem:[%s1375_s1 + $0x60] sm:$0xff]  ;;  %s1054_s19 = scalar_lea.vmem %s777_s8, 16  ;;  %s1058_s3 = scalar_lea.vmem %s777_s8, 32 }
  0x16   :  { %919 = vmatmul.mubr.msk.f32.gmra.mxu0 %vm70_vm1, %v62_v24  ;;  %946 = vmatprep.mubr.msk.f32.mxu1 %vm268_vm2, %v43_v25  ;;  %v64_v30 = vld [vmem:[%s1375_s1 + $0x58] sm:$0xff]  ;;  %v514_v33 = vld [vmem:[%s1379_s5 + $0x50] sm:$0xff]  ;;  %v66_v35 = vld [vmem:[%s1375_s1 + $0x68] sm:$0xff]  ;;  %p1055_p0 = scmp.ne.s32.totalorder %s777_s8, %s1054_s19  ;;  %p1059_p1 = scmp.lt.s32.totalorder %s777_s8, %s777_s8 }
  0x17   :  { %921 = vmatprep.mubr.msk.f32.mxu0 %vm70_vm1, %v63_v26  ;;  %964 = vmatprep.subr.mxu0 %v516_v27  ;;  %v46_v34 = vld [vmem:[%s1374_s0 + $0x58] sm:$0xff]  ;;  %v47_v36 = vld [vmem:[%s1374_s0 + $0x60] sm:$0xff]  ;;  %v67_v37 = vld [vmem:[%s1375_s1 + $0x70] sm:$0xff]  ;;  %p1060_p2 = scmp.lt.s32.totalorder %s1058_s3, %s1054_s19 }
  0x18   :  { %965 = vmatpush3.msra.mxu0 %v516_v27  ;;  %v513_v38 = vld [vmem:[%s1379_s5 + $0x48] sm:$0xff]  ;;  %v512_v40 = vld [vmem:[%s1379_s5 + $0x40] sm:$0xff]  ;;  %v68_v41 = vld [vmem:[%s1375_s1 + $0x78] sm:$0xff] }
  0x19   :  { %947 = vmatmul.mubr.msk.f32.gmra.mxu1 %vm268_vm2, %v44_v28  ;;  %966 = vmatprep.subr.mxu0 %v515_v29  ;;  %v48_v39 = vld [vmem:[%s1374_s0 + $0x68] sm:$0xff]  ;;  %v49_v42 = vld [vmem:[%s1374_s0 + $0x70] sm:$0xff]  ;;  %v511_v43 = vld [vmem:[%s1379_s5 + $0x38] sm:$0xff]  ;;  %p1061_p3 = por %p1060_p2, %p1059_p1 }
  0x1a   :  { %922 = vmatmul.mubr.msk.f32.gmra.mxu0 %vm70_vm1, %v64_v30  ;;  %949 = vmatprep.mubr.msk.f32.mxu1 %vm268_vm2, %v45_v31  ;;  %v50_v44 = vld [vmem:[%s1374_s0 + $0x78] sm:$0xff]  ;;  %v510_v45 = vld [vmem:[%s1379_s5 + $0x30] sm:$0xff]  ;;  %v509_v46 = vld [vmem:[%s1379_s5 + $0x28] sm:$0xff] }
  0x1b   :  { %924 = vmatprep.mubr.msk.f32.mxu0 %vm70_vm1, %v65_v32  ;;  %967 = vmatpush3.msra.mxu0 %v515_v29  ;;  %v508_v47 = vld [vmem:[%s1379_s5 + $0x20] sm:$0xff]  ;;  %v507_v48 = vld [vmem:[%s1379_s5 + $0x18] sm:$0xff]  ;;  %v506_v49 = vld [vmem:[%s1379_s5 + $0x10] sm:$0xff]  ;;  %p1062_p4 = pnand %p1061_p3, %p1055_p0 }
  0x1c   :  { %968 = vmatprep.subr.mxu0 %v514_v33  ;;  %v505_v50 = vld [vmem:[%s1379_s5 + $0x8] sm:$0xff]  ;;  %v504_v51 = vld [vmem:[%s1379_s5] sm:$0xff] }
  0x1d   :  { %950 = vmatmul.mubr.msk.f32.gmra.mxu1 %vm268_vm2, %v46_v34  ;;  %969 = vmatpush3.msra.mxu0 %v514_v33  ;;  %v1321_v56 = vld [vmem:[%s1378_s4] ss:$0 sm:$0xff] }
  0x1e   :  { %925 = vmatmul.mubr.msk.f32.gmra.mxu0 %vm70_vm1, %v66_v35  ;;  %952 = vmatprep.mubr.msk.f32.mxu1 %vm268_vm2, %v47_v36 }
  0x1f   :  { %927 = vmatprep.mubr.msk.f32.mxu0 %vm70_vm1, %v67_v37  ;;  %970 = vmatprep.subr.mxu0 %v513_v38 }
  0x20   :  { %971 = vmatpush3.msra.mxu0 %v513_v38 }
  0x21   :  { %953 = vmatmul.mubr.msk.f32.gmra.mxu1 %vm268_vm2, %v48_v39  ;;  %972 = vmatprep.subr.mxu0 %v512_v40 }
  0x22   :  { %928 = vmatmul.mubr.msk.f32.gmra.mxu0 %vm70_vm1, %v68_v41  ;;  %955 = vmatprep.mubr.msk.f32.mxu1 %vm268_vm2, %v49_v42 }
  0x23   :  { %973 = vmatpush3.msra.mxu0 %v512_v40 }
  0x24   :  { %974 = vmatprep.subr.mxu0 %v511_v43 }
  0x25   :  { %956 = vmatmul.mubr.msk.f32.gmra.mxu1 %vm268_vm2, %v50_v44  ;;  %975 = vmatpush3.msra.mxu0 %v511_v43 }
  0x26   :  { %976 = vmatprep.subr.mxu0 %v510_v45 }
  0x27   :  { %977 = vmatpush3.msra.mxu0 %v510_v45 }
  0x28   :  { %978 = vmatprep.subr.mxu0 %v509_v46 }
  0x29   :  { %979 = vmatpush3.msra.mxu0 %v509_v46 }
  0x2a   :  { %980 = vmatprep.subr.mxu0 %v508_v47 }
  0x2b   :  { %981 = vmatpush3.msra.mxu0 %v508_v47 }
  0x2c   :  { %982 = vmatprep.subr.mxu0 %v507_v48 }
  0x2d   :  { %983 = vmatpush3.msra.mxu0 %v507_v48 }
  0x2e   :  { %984 = vmatprep.subr.mxu0 %v506_v49 }
  0x2f   :  { %985 = vmatpush3.msra.mxu0 %v506_v49 }
  0x30   :  { %986 = vmatprep.subr.mxu0 %v505_v50 }
  0x31   :  { %987 = vmatpush3.msra.mxu0 %v505_v50 }
  0x32   :  { %988 = vmatprep.subr.mxu0 %v504_v51 }
  0x33   :  { %989 = vmatpush3.msra.mxu0 %v504_v51 }
  0xc6   :  { %v908_v52 = vpop.f32.mrf.mxu0 }
  0xc8   :  { %v189_v53 = vpop.f32.mrf.mxu0 }
  0xc9   :  { %v936_v54 = vpop.f32.mrf.mxu1 }
  0xca   :  { %v392_v55 = vadd.f32 %v936_v54, %v908_v52  ;;  %v911_v57 = vpop.f32.mrf.mxu0 }
  0xcb   :  { %v386_v58 = vpop.f32.mrf.mxu1 }
  0xcc   :  { %v387_v59 = vadd.f32 %v386_v58, %v189_v53  ;;  %v199_v60 = vpop.f32.mrf.mxu0  ;;  %v473_v61 = vadd.f32 %v1321_v56, %v392_v55 }
  0xcd   :  { %v939_v62 = vpop.f32.mrf.mxu1 }
  0xce   :  { %v472_v63 = vadd.f32 %v1321_v56, %v387_v59  ;;  %v402_v0 = vadd.f32 %v939_v62, %v911_v57  ;;  %v914_v1 = vpop.f32.mrf.mxu0  ;;  %v489_v6 = vmax.f32 %v473_v61, 0.0 }
  0xcf   :  { %v396_v2 = vpop.f32.mrf.mxu1 }
  0xd0   :  { %v488_v3 = vmax.f32 %v472_v63, 0.0  ;;  %v397_v4 = vadd.f32 %v396_v2, %v199_v60  ;;  %v209_v5 = vpop.f32.mrf.mxu0  ;;  %v475_v7 = vadd.f32 %v1321_v56, %v402_v0 }
  0xd1   :  { %v942_v8 = vpop.f32.mrf.mxu1 }
  0xd2   :  { %v474_v9 = vadd.f32 %v1321_v56, %v397_v4  ;;  %v412_v10 = vadd.f32 %v942_v8, %v914_v1  ;;  %990 = vmatprep.mubr.f32.mxu0 %v488_v3  ;;  %v917_v11 = vpop.f32.mrf.mxu0  ;;  %v491_v16 = vmax.f32 %v475_v7, 0.0  ;;  %v689_v7 = vld [vmem:[#allocation2] sm:$0x1]  ;;  %v1078_v8 = vmov 0  }
  0xd3   :  { %v406_v12 = vpop.f32.mrf.mxu1  ;;  %991 = vmatmul.mubr.f32.vlgmr.msra.gmra.mxu0 %v489_v6  ;;  %v1076_v6 = vmov 0.0   ;;  %1053 = vset.pattern.permute.xlu0 %v1078_v8 }
  0xd4   :  { %v490_v13 = vmax.f32 %v474_v9, 0.0  ;;  %v407_v14 = vadd.f32 %v406_v12, %v209_v5  ;;  %v219_v15 = vpop.f32.mrf.mxu0  ;;  %v477_v17 = vadd.f32 %v1321_v56, %v412_v10  ;;  %1014 = vmatprep.subr.mxu1 %v1076_v6  ;;  %1046 = vmatprep.mubr.msk.f32.mxu1 %vm1077_vm3, %v1076_v6 }
  0xd5   :  { %v945_v18 = vpop.f32.mrf.mxu1  ;;  %692 = vperm.xlu0 %1053, %v689_v7  }
  0xd6   :  { %v476_v19 = vadd.f32 %v1321_v56, %v407_v14  ;;  %v422_v20 = vadd.f32 %v945_v18, %v917_v11  ;;  %993 = vmatprep.mubr.f32.mxu0 %v490_v13  ;;  %v920_v21 = vpop.f32.mrf.mxu0  ;;  %v493_v26 = vmax.f32 %v477_v17, 0.0 }
  0xd7   :  { %v416_v22 = vpop.f32.mrf.mxu1  ;;  %994 = vmatmul.mubr.f32.gmra.mxu0 %v491_v16 }
  0xd8   :  { %v492_v23 = vmax.f32 %v476_v19, 0.0  ;;  %v417_v24 = vadd.f32 %v416_v22, %v219_v15  ;;  %v229_v25 = vpop.f32.mrf.mxu0  ;;  %v479_v27 = vadd.f32 %v1321_v56, %v422_v20  ;;  %v819_v22 = vld [vmem:[%s1380_s6] ss:$0 sm:$0xff] }
  0xd9   :  { %v948_v28 = vpop.f32.mrf.mxu1 }
  0xda   :  { %v478_v29 = vadd.f32 %v1321_v56, %v417_v24  ;;  %v432_v30 = vadd.f32 %v948_v28, %v920_v21  ;;  %996 = vmatprep.mubr.f32.mxu0 %v492_v23  ;;  %v923_v31 = vpop.f32.mrf.mxu0  ;;  %v495_v36 = vmax.f32 %v479_v27, 0.0 }
  0xdb   :  { %v426_v32 = vpop.f32.mrf.mxu1  ;;  %997 = vmatmul.mubr.f32.gmra.mxu0 %v493_v26 }
  0xdc   :  { %v494_v33 = vmax.f32 %v478_v29, 0.0  ;;  %v427_v34 = vadd.f32 %v426_v32, %v229_v25  ;;  %v239_v35 = vpop.f32.mrf.mxu0  ;;  %v481_v37 = vadd.f32 %v1321_v56, %v432_v30 }
  0xdd   :  { %v951_v38 = vpop.f32.mrf.mxu1 }
  0xde   :  { %v480_v39 = vadd.f32 %v1321_v56, %v427_v34  ;;  %v442_v40 = vadd.f32 %v951_v38, %v923_v31  ;;  %999 = vmatprep.mubr.f32.mxu0 %v494_v33  ;;  %v926_v41 = vpop.f32.mrf.mxu0  ;;  %v497_v46 = vmax.f32 %v481_v37, 0.0 }
  0xdf   :  { %v436_v42 = vpop.f32.mrf.mxu1  ;;  %1000 = vmatmul.mubr.f32.gmra.mxu0 %v495_v36 }
  0xe0   :  { %v496_v43 = vmax.f32 %v480_v39, 0.0  ;;  %v437_v44 = vadd.f32 %v436_v42, %v239_v35  ;;  %v249_v45 = vpop.f32.mrf.mxu0  ;;  %v483_v47 = vadd.f32 %v1321_v56, %v442_v40 }
  0xe1   :  { %v954_v48 = vpop.f32.mrf.mxu1 }
  0xe2   :  { %v482_v49 = vadd.f32 %v1321_v56, %v437_v44  ;;  %v452_v50 = vadd.f32 %v954_v48, %v926_v41  ;;  %1002 = vmatprep.mubr.f32.mxu0 %v496_v43  ;;  %v929_v51 = vpop.f32.mrf.mxu0  ;;  %v499_v55 = vmax.f32 %v483_v47, 0.0 }
  0xe3   :  { %v446_v52 = vpop.f32.mrf.mxu1  ;;  %1003 = vmatmul.mubr.f32.gmra.mxu0 %v497_v46 }
  0xe4   :  { %v498_v53 = vmax.f32 %v482_v49, 0.0  ;;  %v447_v54 = vadd.f32 %v446_v52, %v249_v45  ;;  %v485_v57 = vadd.f32 %v1321_v56, %v452_v50  ;;  %v259_v61 = vpop.f32.mrf.mxu0 }
  0xe5   :  { %v957_v58 = vpop.f32.mrf.mxu1 }
  0xe6   :  { %v484_v59 = vadd.f32 %v1321_v56, %v447_v54  ;;  %v462_v60 = vadd.f32 %v957_v58, %v929_v51  ;;  %1005 = vmatprep.mubr.f32.mxu0 %v498_v53  ;;  %v501_v1 = vmax.f32 %v485_v57, 0.0  ;;  %v688_v58 = vld [vmem:[%s1381_s7] sm:$0x1] }
  0xe7   :  { %v456_v62 = vpop.f32.mrf.mxu1  ;;  %1006 = vmatmul.mubr.f32.gmra.mxu0 %v499_v55 }
  0xe8   :  { %v500_v63 = vmax.f32 %v484_v59, 0.0  ;;  %v457_v0 = vadd.f32 %v456_v62, %v259_v61  ;;  %v487_v2 = vadd.f32 %v1321_v56, %v462_v60  ;;  %v695_v59 = vlaneseq }
  0xea   :  { %v486_v3 = vadd.f32 %v1321_v56, %v457_v0  ;;  %1008 = vmatprep.mubr.f32.mxu0 %v500_v63  ;;  %v503_v5 = vmax.f32 %v487_v2, 0.0  ;;  %v696_v60 = vshrl.u32 %v695_v59, 7 }
  0xeb   :  { %1009 = vmatmul.mubr.f32.gmra.mxu0 %v501_v1 }
  0xec   :  { %v502_v4 = vmax.f32 %v486_v3, 0.0  ;;  %v697_v61 = vsub.s32 0, %v696_v60 }
  0xee   :  { %1011 = vmatprep.mubr.f32.mxu0 %v502_v4 }
  0xef   :  { %1012 = vmatmul.mubr.f32.gmra.mxu0 %v503_v5 }
 0x150   :  { %v693_v62 = vpop.permute.xlu0 %692 }
 0x151   :  { %v698_v63 = vrot.slane %v693_v62, %v697_v61 }
 0x193   :  { %v1341_v9 = vpop.f32.mrf.mxu0 }
 0x194   :  { %v599_v52 = vadd.f32 %v1341_v9, %v819_v22 }
 0x195   :  { %v1343_v10 = vpop.f32.mrf.mxu0 }
 0x196   :  { %v673_v54 = vmax.f32 %v599_v52, 0.0  ;;  %v594_v55 = vadd.f32 %v819_v22, %v1343_v10 }
 0x197   :  { %v995_v56 = vpop.f32.mrf.mxu0 }
 0x198   :  { %v609_v48 = vadd.f32 %v995_v56, %v819_v22  ;;  %v672_v57 = vmax.f32 %v594_v55, 0.0 }
 0x199   :  { %v1345_v11 = vpop.f32.mrf.mxu0 }
 0x19a   :  { %v675_v50 = vmax.f32 %v609_v48, 0.0  ;;  %v604_v51 = vadd.f32 %v819_v22, %v1345_v11 }
 0x19b   :  { %v998_v12 = vpop.f32.mrf.mxu0 }
 0x19c   :  { %v619_v44 = vadd.f32 %v998_v12, %v819_v22  ;;  %v674_v53 = vmax.f32 %v604_v51, 0.0 }
 0x19d   :  { %v613_v13 = vpop.f32.mrf.mxu0 }
 0x19e   :  { %v677_v46 = vmax.f32 %v619_v44, 0.0  ;;  %v614_v47 = vadd.f32 %v819_v22, %v613_v13 }
 0x19f   :  { %v1001_v14 = vpop.f32.mrf.mxu0 }
 0x1a0   :  { %v629_v40 = vadd.f32 %v1001_v14, %v819_v22  ;;  %v676_v49 = vmax.f32 %v614_v47, 0.0 }
 0x1a1   :  { %v623_v15 = vpop.f32.mrf.mxu0 }
 0x1a2   :  { %v679_v42 = vmax.f32 %v629_v40, 0.0  ;;  %v624_v43 = vadd.f32 %v819_v22, %v623_v15 }
 0x1a3   :  { %v1004_v16 = vpop.f32.mrf.mxu0 }
 0x1a4   :  { %v639_v36 = vadd.f32 %v1004_v16, %v819_v22  ;;  %v678_v45 = vmax.f32 %v624_v43, 0.0 }
 0x1a5   :  { %v633_v17 = vpop.f32.mrf.mxu0 }
 0x1a6   :  { %v681_v38 = vmax.f32 %v639_v36, 0.0  ;;  %v634_v39 = vadd.f32 %v819_v22, %v633_v17 }
 0x1a7   :  { %v1007_v18 = vpop.f32.mrf.mxu0 }
 0x1a8   :  { %v649_v32 = vadd.f32 %v1007_v18, %v819_v22  ;;  %v680_v41 = vmax.f32 %v634_v39, 0.0 }
 0x1a9   :  { %v643_v19 = vpop.f32.mrf.mxu0 }
 0x1aa   :  { %v683_v34 = vmax.f32 %v649_v32, 0.0  ;;  %v644_v35 = vadd.f32 %v819_v22, %v643_v19 }
 0x1ab   :  { %v1010_v20 = vpop.f32.mrf.mxu0 }
 0x1ac   :  { %v659_v28 = vadd.f32 %v1010_v20, %v819_v22  ;;  %v682_v37 = vmax.f32 %v644_v35, 0.0 }
 0x1ad   :  { %v653_v21 = vpop.f32.mrf.mxu0 }
 0x1ae   :  { %v685_v30 = vmax.f32 %v659_v28, 0.0  ;;  %v654_v31 = vadd.f32 %v819_v22, %v653_v21 }
 0x1af   :  { %v1013_v23 = vpop.f32.mrf.mxu0 }
 0x1b0   :  { %v669_v24 = vadd.f32 %v1013_v23, %v819_v22  ;;  %v684_v33 = vmax.f32 %v654_v31, 0.0 }
 0x1b1   :  { %v663_v25 = vpop.f32.mrf.mxu0 }
 0x1b2   :  { %v687_v26 = vmax.f32 %v669_v24, 0.0  ;;  %v664_v27 = vadd.f32 %v819_v22, %v663_v25 }
 0x1b4   :  { %1015 = vmatpush3.xpose.msra.mxu1 %v687_v26  ;;  %v686_v29 = vmax.f32 %v664_v27, 0.0 }
 0x1b5   :  { %1016 = vmatprep.subr.mxu1 %v1076_v6 }
 0x1b8   :  { %1017 = vmatpush3.xpose.msra.mxu1 %v686_v29 }
 0x1b9   :  { %1018 = vmatprep.subr.mxu1 %v1076_v6 }
 0x1bc   :  { %1019 = vmatpush3.xpose.msra.mxu1 %v685_v30 }
 0x1bd   :  { %1020 = vmatprep.subr.mxu1 %v1076_v6 }
 0x1c0   :  { %1021 = vmatpush3.xpose.msra.mxu1 %v684_v33 }
 0x1c1   :  { %1022 = vmatprep.subr.mxu1 %v1076_v6 }
 0x1c4   :  { %1023 = vmatpush3.xpose.msra.mxu1 %v683_v34 }
 0x1c5   :  { %1024 = vmatprep.subr.mxu1 %v1076_v6 }
 0x1c8   :  { %1025 = vmatpush3.xpose.msra.mxu1 %v682_v37 }
 0x1c9   :  { %1026 = vmatprep.subr.mxu1 %v1076_v6 }
 0x1cc   :  { %1027 = vmatpush3.xpose.msra.mxu1 %v681_v38 }
 0x1cd   :  { %1028 = vmatprep.subr.mxu1 %v1076_v6 }
 0x1d0   :  { %1029 = vmatpush3.xpose.msra.mxu1 %v680_v41 }
 0x1d1   :  { %1030 = vmatprep.subr.mxu1 %v1076_v6 }
 0x1d4   :  { %1031 = vmatpush3.xpose.msra.mxu1 %v679_v42 }
 0x1d5   :  { %1032 = vmatprep.subr.mxu1 %v1076_v6 }
 0x1d8   :  { %1033 = vmatpush3.xpose.msra.mxu1 %v678_v45 }
 0x1d9   :  { %1034 = vmatprep.subr.mxu1 %v1076_v6 }
 0x1dc   :  { %1035 = vmatpush3.xpose.msra.mxu1 %v677_v46 }
 0x1dd   :  { %1036 = vmatprep.subr.mxu1 %v1076_v6 }
 0x1e0   :  { %1037 = vmatpush3.xpose.msra.mxu1 %v676_v49 }
 0x1e1   :  { %1038 = vmatprep.subr.mxu1 %v1076_v6 }
 0x1e4   :  { %1039 = vmatpush3.xpose.msra.mxu1 %v675_v50 }
 0x1e5   :  { %1040 = vmatprep.subr.mxu1 %v1076_v6 }
 0x1e8   :  { %1041 = vmatpush3.xpose.msra.mxu1 %v674_v53 }
 0x1e9   :  { %1042 = vmatprep.subr.mxu1 %v1076_v6 }
 0x1ec   :  { %1043 = vmatpush3.xpose.msra.mxu1 %v673_v54 }
 0x1ed   :  { %1044 = vmatprep.subr.mxu1 %v1076_v6 }
 0x1f0   :  { %1045 = vmatpush3.xpose.msra.mxu1 %v672_v57 }
 0x1f3   :  { %1047 = vmatmul.mubr.f32.vlgmr.msra.gmra.mxu1 %v688_v58 }
 0x2b3   :  { %v765_v0 = vpop.f32.mrf.mxu1 }
 0x2b4   :  { %v766_v1 = vadd.f32 %v765_v0, %v698_v63 }
 0x2b5   :  { %v1048_v2 = vpop.f32.mrf.mxu1 }
 0x2b6   :  { %769 = vst [vmem:[#allocation3] sm:$0x1] %v766_v1 }
 0x2b7   :  { %1065 = shalt.err (!%p1062_p4)
}
 0x2b8   :  { %779 = dma.vmem_to_hbm [thread:$0]  %s777_s8, 16, %s1383_s9, [#allocation4]  }
 0x2b9   :  { %1074 = dma.done.wait [#allocation4], 16  }
 0x2ba   :  { %1075 = vsyncadd [#allocation4], 4294967280 }
 0x2bb   :  { %783 = vsyncpa [#allocation4], 1 }

</bundles_post_ra>
